<compile_context>
chip_gen: v7x
topology: tpu7x:2x2x1
jax: 0.10.0
libtpu: 0.0.40
codegen_flags: <defaults>
</compile_context>

<pallas_src>
import jax
import jax.numpy as jnp
from jax.experimental import pallas as pl
from jax.experimental.pallas import tpu as pltpu


def _round_up(x, m):
    return -(-x // m) * m


def _m_blocking(m):
    """Return (m_padded, block_m): block_m is a multiple of 16 and, whenever
    possible, gives >= 2 blocks along M so the 'parallel' grid axis can be
    sharded across TensorCores (v7x megacore)."""
    if m >= 512:
        bm = 256
    elif m >= 256:
        bm = 128
    else:
        bm = max(16, _round_up(-(-m // 2), 16))   # ~half of m, 16-aligned
        if bm >= m:                               # too small for 2 useful blocks
            bm = _round_up(m, 16)
    return _round_up(m, bm), bm


def _fused_stack_kernel(x_ref, w_ref, b_ref, o_ref):
    """o = relu(... relu(relu(x @ W0 + b0) @ W1 + b1) ... @ W_{L-1} + b_{L-1}).

    x_ref: (bm, D) bf16   w_ref: (L, D, D) bf16   b_ref: (L, 1, D) f32
    o_ref: (bm, D) f32
    The activation block never leaves VMEM between layers; the small, static
    layer loop is unrolled at trace time.
    """
    num_layers = w_ref.shape[0]
    h = x_ref[...]                                     # (bm, D) bf16
    y = None
    for layer in range(num_layers):                    # static unroll (small L)
        y = jnp.dot(h, w_ref[layer], preferred_element_type=jnp.float32)
        y = jnp.maximum(y + b_ref[layer], 0.0)         # bias + ReLU; dropout = id
        h = y.astype(jnp.bfloat16)                     # bf16 operand for next MXU
    o_ref[...] = y


def tabm_mini_forward(x, R, weights, biases):
    """TabM_mini forward: ReLU-MLP stack applied to X * R (eval-mode dropout).

    x: (batch, k, in_features) f32; R: (k, in_features) f32;
    weights[i]: (d_i, d_{i+1}) f32; biases[i]: (d_{i+1},) f32.
    Returns (batch, k, d_L) f32.
    """
    assert len(weights) >= 1 and len(weights) == len(biases)
    batch, k, in_f = x.shape
    num_layers = len(weights)
    out_f = weights[-1].shape[1]

    dims = [in_f] + [w.shape[1] for w in weights]
    d = _round_up(max(dims), 128)                      # common lane-dense width
    m = batch * k
    m_pad, bm = _m_blocking(m)

    # Wrapper-side prep: X*R, flatten, zero-pad, bf16 cast.  Keeps the kernel
    # free of relayout reshapes and per-grid-step casts; zero padding is exact
    # for the matmul (padded K rows/cols contribute 0, padded bias is 0 so
    # padded output columns stay 0 through ReLU).
    xr = (x * R[None, :, :]).reshape(m, in_f).astype(jnp.bfloat16)
    xr = jnp.pad(xr, ((0, m_pad - m), (0, d - in_f)))

    w_stack = jnp.stack([
        jnp.pad(w.astype(jnp.bfloat16),
                ((0, d - w.shape[0]), (0, d - w.shape[1])))
        for w in weights])                             # (L, D, D) bf16
    b_stack = jnp.stack([
        jnp.pad(b.astype(jnp.float32), (0, d - b.shape[0])).reshape(1, d)
        for b in biases])                              # (L, 1, D) f32

    resident_bytes = w_stack.size * 2 + b_stack.size * 4
    assert resident_bytes <= 32 * 1024 * 1024, (
        "weight stack too large to keep VMEM-resident; stream per layer")

    grid = (m_pad // bm,)
    cost = pl.CostEstimate(
        flops=2 * m_pad * d * d * num_layers,
        transcendentals=0,
        bytes_accessed=(m_pad * d * 2          # bf16 activations in
                        + w_stack.size * 2     # resident weights, read once
                        + b_stack.size * 4     # biases
                        + m_pad * d * 4),      # f32 output
    )

    out = pl.pallas_call(
        _fused_stack_kernel,
        out_shape=jax.ShapeDtypeStruct((m_pad, d), jnp.float32),
        grid_spec=pltpu.PrefetchScalarGridSpec(
            num_scalar_prefetch=0,
            grid=grid,
            in_specs=[
                pl.BlockSpec((bm, d), lambda i: (i, 0)),                # acts
                pl.BlockSpec((num_layers, d, d), lambda i: (0, 0, 0)),  # W stack
                pl.BlockSpec((num_layers, 1, d), lambda i: (0, 0, 0)),  # b stack
            ],
            out_specs=pl.BlockSpec((bm, d), lambda i: (i, 0)),
        ),
        compiler_params=pltpu.CompilerParams(
            dimension_semantics=("parallel",),
            vmem_limit_bytes=48 * 1024 * 1024,      # sized for v7x's 64 MiB
        ),
        cost_estimate=cost,
    )(xr, w_stack, b_stack)

    return out[:m, :out_f].reshape(batch, k, out_f)


def reference_forward(x, R, weights, biases):
    """Pure-JAX reference with the same mixed precision as the kernel
    (bf16 MXU operands / intermediates, f32 accumulation + f32 epilogue)."""
    batch, k, _ = x.shape
    h = (x * R[None, :, :]).reshape(batch * k, -1)
    y = h
    for W, b in zip(weights, biases):
        y = jnp.dot(h.astype(jnp.bfloat16), W.astype(jnp.bfloat16),
                    preferred_element_type=jnp.float32)
        y = jnp.maximum(y + b.reshape(1, -1), 0.0)
        h = y
    return y.reshape(batch, k, -1)


if __name__ == "__main__":
    # Small shapes consistent with the module: batch=8, k=32, in=64, hidden=[128, 128]
    batch, k, in_features = 8, 32, 64
    hidden_sizes = [128, 128]

    key = jax.random.PRNGKey(0)
    kx, kr, *kws = jax.random.split(key, 2 + 2 * len(hidden_sizes))

    X = jax.random.normal(kx, (batch, k, in_features), dtype=jnp.float32)
    R = jax.random.normal(kr, (k, in_features), dtype=jnp.float32)   # torch.randn

    layer_sizes = [in_features] + hidden_sizes
    weights, biases = [], []
    for i in range(len(hidden_sizes)):
        bound = 1.0 / (layer_sizes[i] ** 0.5)          # nn.Linear default init
        weights.append(jax.random.uniform(
            kws[2 * i], (layer_sizes[i], layer_sizes[i + 1]),
            minval=-bound, maxval=bound, dtype=jnp.float32))
        biases.append(jax.random.uniform(
            kws[2 * i + 1], (layer_sizes[i + 1],),
            minval=-bound, maxval=bound, dtype=jnp.float32))

    out = tabm_mini_forward(X, R, weights, biases)
    out = jax.block_until_ready(out)

    ref = reference_forward(X, R, weights, biases)
    assert out.shape == (batch, k, hidden_sizes[-1]), out.shape
    assert jnp.allclose(out, ref, atol=1e-3, rtol=1e-3), float(
        jnp.max(jnp.abs(out - ref)))

    print("KERNEL_OK")
</pallas_src>

<mosaic_0001>
module attributes {stable_mosaic.version = 11 : i64} {
  func.func @_fused_stack_kernel(%arg0: i32, %arg1: memref<128x128xbf16, #tpu.memory_space<vmem>>, %arg2: memref<2x128x128xbf16, #tpu.memory_space<vmem>>, %arg3: memref<2x1x128xf32, #tpu.memory_space<vmem>>, %arg4: memref<128x128xf32, #tpu.memory_space<vmem>>) attributes {dimension_semantics = [#tpu.dimension_semantics<parallel>], iteration_bounds = array<i64: 2>, scalar_prefetch = 0 : i64, scratch_operands = 0 : i64, tpu.core_type = #tpu.core_type<tc>, window_params = [{transform_indices = @transform_0, window_bounds = array<i64: 128, 128>}, {pipeline_mode = #tpu.pipeline_mode<synchronous>, transform_indices = @transform_1, window_bounds = array<i64: 2, 128, 128>}, {pipeline_mode = #tpu.pipeline_mode<synchronous>, transform_indices = @transform_2, window_bounds = array<i64: 2, 1, 128>}, {transform_indices = @transform_3, window_bounds = array<i64: 128, 128>}]} {
    %c0 = arith.constant 0 : index
    %c0_0 = arith.constant 0 : index
    %0 = vector.load %arg1[%c0, %c0_0] : memref<128x128xbf16, #tpu.memory_space<vmem>>, vector<128x128xbf16>
    %c0_1 = arith.constant 0 : index
    %c0_2 = arith.constant 0 : index
    %c0_3 = arith.constant 0 : index
    %1 = vector.load %arg2[%c0_1, %c0_2, %c0_3] : memref<2x128x128xbf16, #tpu.memory_space<vmem>>, vector<1x128x128xbf16>
    %2 = vector.shape_cast %1 : vector<1x128x128xbf16> to vector<128x128xbf16>
    %cst = arith.constant dense<0.000000e+00> : vector<128x128xf32>
    %3 = tpu.matmul %0, %2, %cst {dimension_numbers = #tpu.dot_dimension_numbers<[1], [0], [0], [1], [0, 0, 1, 1], [], []>} : vector<128x128xbf16>, vector<128x128xbf16>, vector<128x128xf32> -> vector<128x128xf32>
    %c0_4 = arith.constant 0 : index
    %c0_5 = arith.constant 0 : index
    %c0_6 = arith.constant 0 : index
    %4 = vector.load %arg3[%c0_4, %c0_5, %c0_6] : memref<2x1x128xf32, #tpu.memory_space<vmem>>, vector<1x1x128xf32>
    %5 = vector.shape_cast %4 : vector<1x1x128xf32> to vector<1x128xf32>
    %6 = vector.broadcast %5 : vector<1x128xf32> to vector<128x128xf32>
    %7 = arith.addf %3, %6 : vector<128x128xf32>
    %cst_7 = arith.constant 0.000000e+00 : f32
    %8 = vector.broadcast %cst_7 : f32 to vector<128x128xf32>
    %9 = arith.maximumf %7, %8 : vector<128x128xf32>
    %10 = arith.truncf %9 : vector<128x128xf32> to vector<128x128xbf16>
    %c1 = arith.constant 1 : index
    %c0_8 = arith.constant 0 : index
    %c0_9 = arith.constant 0 : index
    %11 = vector.load %arg2[%c1, %c0_8, %c0_9] : memref<2x128x128xbf16, #tpu.memory_space<vmem>>, vector<1x128x128xbf16>
    %12 = vector.shape_cast %11 : vector<1x128x128xbf16> to vector<128x128xbf16>
    %cst_10 = arith.constant dense<0.000000e+00> : vector<128x128xf32>
    %13 = tpu.matmul %10, %12, %cst_10 {dimension_numbers = #tpu.dot_dimension_numbers<[1], [0], [0], [1], [0, 0, 1, 1], [], []>} : vector<128x128xbf16>, vector<128x128xbf16>, vector<128x128xf32> -> vector<128x128xf32>
    %c1_11 = arith.constant 1 : index
    %c0_12 = arith.constant 0 : index
    %c0_13 = arith.constant 0 : index
    %14 = vector.load %arg3[%c1_11, %c0_12, %c0_13] : memref<2x1x128xf32, #tpu.memory_space<vmem>>, vector<1x1x128xf32>
    %15 = vector.shape_cast %14 : vector<1x1x128xf32> to vector<1x128xf32>
    %16 = vector.broadcast %15 : vector<1x128xf32> to vector<128x128xf32>
    %17 = arith.addf %13, %16 : vector<128x128xf32>
    %cst_14 = arith.constant 0.000000e+00 : f32
    %18 = vector.broadcast %cst_14 : f32 to vector<128x128xf32>
    %19 = arith.maximumf %17, %18 : vector<128x128xf32>
    %c0_15 = arith.constant 0 : index
    %c0_16 = arith.constant 0 : index
    %20 = vector.load %arg4[%c0_15, %c0_16] : memref<128x128xf32, #tpu.memory_space<vmem>>, vector<128x128xf32>
    tpu.vector_store %arg4[%c0_15, %c0_16], %19 {strides = array<i32>} : memref<128x128xf32, #tpu.memory_space<vmem>>, vector<128x128xf32>,
    return
  }
  func.func @transform_0(%arg0: i32) -> (i32, i32) {
    %c0_i32 = arith.constant 0 : i32
    %c0_i32_0 = arith.constant 0 : i32
    return %arg0, %c0_i32 : i32, i32
  }
  func.func @transform_1(%arg0: i32) -> (i32, i32, i32) {
    %c0_i32 = arith.constant 0 : i32
    %c0_i32_0 = arith.constant 0 : i32
    %c0_i32_1 = arith.constant 0 : i32
    %c0_i32_2 = arith.constant 0 : i32
    return %c0_i32, %c0_i32_0, %c0_i32_1 : i32, i32, i32
  }
  func.func @transform_2(%arg0: i32) -> (i32, i32, i32) {
    %c0_i32 = arith.constant 0 : i32
    %c0_i32_0 = arith.constant 0 : i32
    %c0_i32_1 = arith.constant 0 : i32
    %c0_i32_2 = arith.constant 0 : i32
    return %c0_i32, %c0_i32_0, %c0_i32_1 : i32, i32, i32
  }
  func.func @transform_3(%arg0: i32) -> (i32, i32) {
    %c0_i32 = arith.constant 0 : i32
    %c0_i32_0 = arith.constant 0 : i32
    return %arg0, %c0_i32 : i32, i32
  }
}

</mosaic_0001>

<bundles_post_ra>
// kernel: tpu_custom_call.1
= control target key start
LH: loop header
LB: loop body
LE: loop exit
PB: predicated region body
PF: predicated region fallthrough
CT: control target
= control target key end

     0   :  { %8 = vsyncpa [#allocation3], 0  ;;  %s1388_s0 = inlined_call_operand.hbm [shape: bf16[256,128], index: 0, kind: input, shape index: {}]   ;;  %s1389_s1 = inlined_call_operand.hbm [shape: bf16[2,128,128], index: 1, kind: input, shape index: {}]   ;;  %s1390_s2 = inlined_call_operand.vmem [shape: f32[2,1,128], index: 2, kind: input, shape index: {}]   ;;  %s1391_s3 = inlined_call_operand.hbm [shape: f32[256,128], index: 3, kind: output, shape index: {}]  }
   0x1   :  { %10 = vsyncpa [#allocation3 + $0x1], 0 }
   0x2   :  { %11 = vsyncpa [#allocation6], 0 }
   0x3   :  { %12 = vsyncpa [#allocation4], 0 }
   0x4   :  { %14 = vsyncpa [#allocation4 + $0x1], 0  ;;  %s1145_s12 = smov 0   ;;  %s1147_s13 = smov 0  }
   0x5   :  { %s1149_s14 = smov 0   ;;  %s1151_s15 = smov 0  }
   0x6 LB: > { %s1166_s16 = sadd.s32 4294967295, %s1116_s15   ;;  %s762_s17 = sadd.s32 4294967294, %s1116_s15   ;;  %s1116_s15 = sphi %s1151_s15, %s1411_s15   ;;  %s1112_s14 = sphi %s1149_s14, %s1410_s14   ;;  %s1108_s13 = sphi %s1147_s13, %s1409_s13   ;;  %s1104_s12 = sphi %s1145_s12, %s1408_s12  }
   0x7   : > { %p40_p0 = scmp.ne.s32.totalorder %s1108_s13, %s1104_s12  ;;  %p1392_p1 = scmp.eq.s32.totalorder %s1166_s16, 0 }
   0x8   : > { %p112_p3 = scmp.eq.s32.totalorder %s762_s17, 1  ;;  %p763_p5 = scmp.ge.s32.totalorder %s1116_s15, 1 }
   0x9   : > { %p1175_p4 = por %p1392_p1, %p40_p0  ;;  %p119_p7 = scmp.lt.s32.totalorder %s1116_s15, 3 }
   0xa   : > { %p1180_p6 = por %p112_p3, %p40_p0  ;;  %s1118_s21 = smov [#allocation5]  }
   0xb   : > { %s1395_s18 = scalar_select %p1175_p4, 1, 0 }
   0xc   : > { %s1396_s19 = scalar_select %p1180_p6, 1, 0 }
   0xd   : > { %p1185_p8 = pnand %p763_p5, %p119_p7  ;;  %s131_s22 = sshll.u32 %s1118_s21, 4  ;;  %s1189_s22 = int_to_ptr.vmem [resolvable:$true] %s131_s22 }
   0xe   : > { %s1201_s24 = sadd.s32 1, %s1116_s15   ;;  %s27_s25 = sadd.s32 1, %s1112_s14 }
   0xf   : > { %s1397_s20 = scalar_select %p1185_p8, 1, 0 }
  0x10   : > { %p911_p9 = pneg %p1185_p8  ;;  %s24_s26 = ssub.s32 %s1116_s15, %s1201_s24 }
  0x11   : > { %s988_s29 = scalar_lea.hbm %s1389_s1, 2048 }
  0x12   : > { %p1196_p11 = pnand %p911_p9, %p1392_p1  ;;  %p989_p12 = scmp.ne.s32.totalorder %s1389_s1, %s988_s29 }
  0x13   : > { %p995_p5 = scmp.lt.u32.totalorder %s988_s29, %s1389_s1 }
  0x14   : > { %p990_p13 = pneg %p1196_p11 }
  0x16   : > { %p991_p0 = pnand %p990_p13, %p989_p12 }
  0x18   : > { %p992_p3 = pneg %p991_p0 }
  0x1a   : > { %p997_p7 = pnand %p995_p5, %p992_p3 }
  0x1c   : > { %1000 = shalt.err (!%p997_p7)
}
  0x1d   : > { %s1001_s7 = scalar_lea.vmem %s1189_s22, 2048  ;;  %p1009_p2 = scmp.lt.s32.totalorder %s1189_s22, %s1189_s22 }
  0x1e   : > { %p1002_p9 = scmp.ne.s32.totalorder %s1189_s22, %s1001_s7  ;;  %p1010_p6 = scmp.lt.s32.totalorder %s1001_s7, %s1001_s7 }
  0x20   : > { %p1004_p10 = pnand %p1002_p9, %p990_p13  ;;  %p1011_p4 = por %p1010_p6, %p1009_p2 }
  0x22   : > { %p1005_p1 = pneg %p1004_p10 }
  0x24   : > { %p1012_p8 = pnand %p1011_p4, %p1005_p1 }
  0x26   : > { %1015 = shalt.err (!%p1012_p8)
}
  0x27   : > { %s1119_s8 = smov 64   ;;  %s1120_s9 = smov 4  }
  0x28   : > { %914 = dma.hbm_to_vmem [thread:$0]  (!%p1196_p11), %s1389_s1, 2048, %s1189_s22, [#allocation6], %s1119_s8, %s1119_s8, %s1120_s9  }
  0x29   : > { %p25_p1 = scmp.eq.s32.totalorder %s24_s26, 0  ;;  %p34_p2 = scmp.ne.s32.totalorder %s1112_s14, %s1108_s13 }
  0x2a   : > { %p35_p4 = scmp.eq.s32.totalorder %s1116_s15, 0  ;;  %p924_p6 = scmp.lt.s32.totalorder %s1116_s15, 2 }
  0x2b   : > { %s1235_s17 = scalar_select %p25_p1, %s1112_s14, %s27_s25  }
  0x2c   : > { %p36_p8 = por %p35_p4, %p34_p2  ;;  %p1399_p10 = scmp.eq.s32.totalorder %s1166_s16, 1 }
  0x2d   : > { %s148_s23 = sand.u32 1, %s1112_s14   ;;  %s805_s27 = sshll.u32 %s1116_s15, 10 }
  0x2e   : > { %p1239_p12 = por %p1399_p10, %p34_p2  ;;  %s766_s28 = sshll.u32 %s148_s23, 6 }
  0x2f   : > { %s1248_s4 = scalar_lea.hbm %s1388_s0, %s805_s27  ;;  %s152_s22 = scalar_lea.vmem [#allocation2], %s766_s28 }
  0x30   : > { %s159_s25 = sshll.u32 %s152_s22, 4  ;;  %p1250_p11 = pnand %p924_p6, %p36_p8  ;;  %s1254_s25 = int_to_ptr.vmem [resolvable:$true] %s159_s25 }
  0x31   : > { %s1256_s5 = scalar_lea.sflag [#allocation3], %s148_s23  ;;  %s1016_s6 = scalar_lea.hbm %s1248_s4, 1024 }
  0x32   : > { %p1017_p13 = scmp.ne.s32.totalorder %s1248_s4, %s1016_s6  ;;  %p1018_p0 = pneg %p1250_p11 }
  0x33   : > { %s1021_s11 = scalar_lea.hbm %s1388_s0, 2048  ;;  %p1022_p7 = scmp.lt.u32.totalorder %s1248_s4, %s1388_s0 }
  0x34   : > { %p1019_p3 = pnand %p1018_p0, %p1017_p13  ;;  %p1023_p9 = scmp.lt.u32.totalorder %s1021_s11, %s1016_s6 }
  0x35   : > { %p1025_p2 = scmp.lt.u32.totalorder %s1016_s6, %s1248_s4 }
  0x36   : > { %p1020_p5 = pneg %p1019_p3  ;;  %p1024_p1 = por %p1023_p9, %p1022_p7 }
  0x38   : > { %p1026_p4 = por %p1025_p2, %p1024_p1 }
  0x3a   : > { %p1027_p6 = pnand %p1026_p4, %p1020_p5 }
  0x3c   : > { %1030 = shalt.err (!%p1027_p6)
}
  0x3d   : > { %s1031_s23 = scalar_lea.vmem %s1254_s25, 1024  ;;  %s1121_s29 = smov [#allocation2]  }
  0x3e   : > { %p1032_p8 = scmp.ne.s32.totalorder %s1254_s25, %s1031_s23  ;;  %s1036_s30 = sshll.u32 %s1121_s29, 4  ;;  %s1037_s30 = int_to_ptr.vmem [resolvable:$false] %s1036_s30 }
  0x3f   : > { %s1038_s22 = scalar_lea.vmem %s1037_s30, 2048  ;;  %p1039_p3 = scmp.lt.s32.totalorder %s1254_s25, %s1037_s30 }
  0x40   : > { %p1034_p10 = pnand %p1032_p8, %p1018_p0  ;;  %p1040_p7 = scmp.lt.s32.totalorder %s1038_s22, %s1031_s23 }
  0x42   : > { %p1035_p13 = pneg %p1034_p10  ;;  %p1041_p9 = por %p1040_p7, %p1039_p3 }
  0x44   : > { %p1042_p1 = pnand %p1041_p9, %p1035_p13 }
  0x46   : > { %1045 = shalt.err (!%p1042_p1)
}
  0x47   : > { %918 = dma.hbm_to_vmem [thread:$0]  (!%p1250_p11), %s1248_s4, 1024, %s1254_s25, %s1256_s5, %s1119_s8, %s1119_s8, %s1120_s9  }
  0x48   : > { %p1402_p0 = scmp.ne.s32.totalorder %s1397_s20, 0 }
  0x49   : > { %s1290_s6 = sand.u32 (!%p1402_p0), 1, %s1108_s13   ;;  %p1403_p5 = scmp.ne.s32.totalorder (!%p1402_p0), %s1395_s18, 0 }
  0x4a   : > { %171 = sbr.rel (%p1402_p0) target bundleno = 598 (0x256), region = 32  ;;  %s770_s7 = sshll.u32 (!%p1402_p0), %s1290_s6, 6 }
  0x4b   : > { %s174_s10 = scalar_lea.sflag (!%p1402_p0), [#allocation3], %s1290_s6  ;;  %s1294_s11 = scalar_lea.vmem (!%p1402_p0), [#allocation2], %s770_s7 }
  0x51   : > { %1091 = dma.done.wait (%p1403_p5), %s174_s10, 1024  }
  0x52   : > { %1093 = vsyncadd (%p1403_p5), %s174_s10, 4294966272  ;;  %p1404_p11 = scmp.eq.s32.totalorder %s1166_s16, 0 }
  0x54   : > { %1095 = dma.done.wait (%p1404_p11), [#allocation6], 2048   ;;  %p1405_p2 = pmov %p1404_p11 }
  0x55   : > { %v964_v0 = vld [vmem:[#allocation5] sm:$0xff]   ;;  %v965_v1 = vld [vmem:[#allocation5 + $0x8] sm:$0xff]   ;;  %v966_v2 = vld [vmem:[#allocation5 + $0x10] sm:$0xff]   ;;  %s772_s4 = sshll.u32 %s1290_s6, 7  ;;  %s806_s26 = sshll.u32 %s1166_s16, 11 }
  0x56   : > { %1097 = vsyncadd (%p1405_p2), [#allocation6], 4294965248  ;;  %839 = vmatprep.subr.bf16.mxu0 %v964_v0  ;;  %v967_v3 = vld [vmem:[#allocation5 + $0x18] sm:$0xff]   ;;  %v972_v4 = vld [vmem:[%s1294_s11] sm:$0xff]   ;;  %s1319_s25 = scalar_lea.vmem [#allocation7], %s772_s4  ;;  %s1339_s23 = scalar_lea.hbm %s1391_s3, %s806_s26 }
  0x57   : > { %840 = vmatpush3.bf16.msra.mxu0 %v964_v0  ;;  %855 = vmatprep.mubr.bf16.mxu0 %v972_v4  ;;  %v968_v5 = vld [vmem:[#allocation5 + $0x20] sm:$0xff]   ;;  %v969_v6 = vld [vmem:[#allocation5 + $0x28] sm:$0xff]   ;;  %v970_v9 = vld [vmem:[#allocation5 + $0x30] sm:$0xff]   ;;  %s679_s5 = sshll.u32 %s1319_s25, 4  ;;  %s666_s16 = scalar_lea.sflag [#allocation4], %s1290_s6  ;;  %s1341_s5 = int_to_ptr.vmem [resolvable:$true] %s679_s5 }
  0x58   : > { %841 = vmatprep.subr.bf16.mxu0 %v965_v1  ;;  %v980_v7 = vld [vmem:[#allocation5 + $0x40] sm:$0xff]   ;;  %v981_v8 = vld [vmem:[#allocation5 + $0x48] sm:$0xff]   ;;  %v982_v10 = vld [vmem:[#allocation5 + $0x50] sm:$0xff]   ;;  %s1046_s29 = scalar_lea.vmem %s1341_s5, 2048  ;;  %s1122_s30 = smov [#allocation7]  }
  0x59   : > { %871 = vmatprep.subr.bf16.mxu1 %v980_v7  ;;  %v971_v11 = vld [vmem:[#allocation5 + $0x38] sm:$0xff]   ;;  %v984_v13 = vld [vmem:[#allocation5 + $0x60] sm:$0xff]   ;;  %v973_v14 = vld [vmem:[%s1294_s11 + $0x8] sm:$0xff]   ;;  %p1047_p4 = scmp.ne.s32.totalorder %s1341_s5, %s1046_s29  ;;  %s1050_s22 = sshll.u32 %s1122_s30, 4  ;;  %s1051_s22 = int_to_ptr.vmem [resolvable:$false] %s1050_s22 }
  0x5a   : > { %872 = vmatpush3.bf16.msra.mxu1 %v980_v7  ;;  %v983_v12 = vld [vmem:[#allocation5 + $0x58] sm:$0xff]   ;;  %v974_v15 = vld [vmem:[%s1294_s11 + $0x10] sm:$0xff]   ;;  %v985_v16 = vld [vmem:[#allocation5 + $0x68] sm:$0xff]   ;;  %s1052_s7 = scalar_lea.vmem %s1051_s22, 4096  ;;  %p1053_p10 = scmp.lt.s32.totalorder %s1341_s5, %s1051_s22 }
  0x5b   : > { %842 = vmatpush3.bf16.msra.mxu0 %v965_v1  ;;  %873 = vmatprep.subr.bf16.mxu1 %v981_v8  ;;  %v975_v17 = vld [vmem:[%s1294_s11 + $0x18] sm:$0xff]   ;;  %v976_v18 = vld [vmem:[%s1294_s11 + $0x20] sm:$0xff]   ;;  %v977_v19 = vld [vmem:[%s1294_s11 + $0x28] sm:$0xff]   ;;  %p1048_p6 = pnand %p1047_p4, %p1239_p12  ;;  %p1054_p13 = scmp.lt.s32.totalorder %s1052_s7, %s1046_s29 }
  0x5c   : > { %843 = vmatprep.subr.bf16.mxu0 %v966_v2  ;;  %v978_v20 = vld [vmem:[%s1294_s11 + $0x30] sm:$0xff]   ;;  %v979_v21 = vld [vmem:[%s1294_s11 + $0x38] sm:$0xff]   ;;  %v773_v24 = vld [vmem:[%s1390_s2] ss:$0 sm:$0xff] }
  0x5d   : > { %v986_v22 = vld [vmem:[#allocation5 + $0x70] sm:$0xff]   ;;  %v987_v23 = vld [vmem:[#allocation5 + $0x78] sm:$0xff]   ;;  %p1049_p8 = pneg %p1048_p6  ;;  %p1055_p3 = por %p1054_p13, %p1053_p10 }
  0x5e   : > { %874 = vmatpush3.bf16.msra.mxu1 %v981_v8 }
  0x5f   : > { %844 = vmatpush3.bf16.msra.mxu0 %v966_v2  ;;  %875 = vmatprep.subr.bf16.mxu1 %v982_v10  ;;  %p1056_p7 = pnand %p1055_p3, %p1049_p8 }
  0x60   : > { %845 = vmatprep.subr.bf16.mxu0 %v967_v3 }
  0x62   : > { %876 = vmatpush3.bf16.msra.mxu1 %v982_v10 }
  0x63   : > { %846 = vmatpush3.bf16.msra.mxu0 %v967_v3  ;;  %877 = vmatprep.subr.bf16.mxu1 %v983_v12 }
  0x64   : > { %847 = vmatprep.subr.bf16.mxu0 %v968_v5 }
  0x66   : > { %878 = vmatpush3.bf16.msra.mxu1 %v983_v12 }
  0x67   : > { %848 = vmatpush3.bf16.msra.mxu0 %v968_v5  ;;  %879 = vmatprep.subr.bf16.mxu1 %v984_v13 }
  0x68   : > { %849 = vmatprep.subr.bf16.mxu0 %v969_v6 }
  0x6a   : > { %880 = vmatpush3.bf16.msra.mxu1 %v984_v13 }
  0x6b   : > { %850 = vmatpush3.bf16.msra.mxu0 %v969_v6  ;;  %881 = vmatprep.subr.bf16.mxu1 %v985_v16 }
  0x6c   : > { %851 = vmatprep.subr.bf16.mxu0 %v970_v9 }
  0x6e   : > { %882 = vmatpush3.bf16.msra.mxu1 %v985_v16 }
  0x6f   : > { %852 = vmatpush3.bf16.msra.mxu0 %v970_v9  ;;  %883 = vmatprep.subr.bf16.mxu1 %v986_v22 }
  0x70   : > { %853 = vmatprep.subr.bf16.mxu0 %v971_v11 }
  0x72   : > { %884 = vmatpush3.bf16.msra.mxu1 %v986_v22 }
  0x73   : > { %854 = vmatpush3.bf16.msra.mxu0 %v971_v11  ;;  %885 = vmatprep.subr.bf16.mxu1 %v987_v23 }
  0x76   : > { %856 = vmatmul.mubr.bf16.vlgmr.msra.gmra.mrb[0].mxu0 %v973_v14  ;;  %886 = vmatpush3.bf16.msra.mxu1 %v987_v23 }
  0x77   : > { %859 = vmatprep.mubr.bf16.mxu0 %v974_v15 }
  0x7e   : > { %860 = vmatmul.mubr.bf16.gmra.mrb[4].mxu0 %v975_v17  ;;  %v791_v17 = vld [vmem:[%s1390_s2 + $0x1] ss:$0 sm:$0xff] }
  0x7f   : > { %863 = vmatprep.mubr.bf16.mxu0 %v976_v18 }
  0x86   : > { %864 = vmatmul.mubr.bf16.gmra.mrb[8].mxu0 %v977_v19 }
  0x87   : > { %867 = vmatprep.mubr.bf16.mxu0 %v978_v20 }
  0x8e   : > { %868 = vmatmul.mubr.bf16.gmra.mrb[12].mxu0 %v979_v21 }
 0x149   : > { %v857_v25 = vpop.f32.mrb[0].mxu0 }
 0x14a   : > { %v385_v26 = vadd.f32 %v857_v25, %v773_v24  ;;  %v376_v27 = vpop.f32.mrb[1].mxu0 }
 0x14b   : > { %v377_v28 = vadd.f32 %v773_v24, %v376_v27  ;;  %v858_v29 = vpop.f32.mrb[2].mxu0 }
 0x14c   : > { %v388_v30 = vadd.f32 %v858_v29, %v773_v24  ;;  %v379_v31 = vpop.f32.mrb[3].mxu0  ;;  %v441_v33 = vmax.f32 %v385_v26, 0.0 }
 0x14d   : > { %v380_v32 = vadd.f32 %v773_v24, %v379_v31  ;;  %v439_v35 = vmax.f32 %v377_v28, 0.0 }
 0x14e   : > { %v442_v34 = vmax.f32 %v388_v30, 0.0 }
 0x14f   : > { %v440_v36 = vmax.f32 %v380_v32, 0.0 }
 0x150   : > { %v456_v37 = vpack.c.bf16 %v442_v34, %v441_v33 }
 0x151   : > { %v861_v38 = vpop.f32.mrb[4].mxu0  ;;  %v455_v39 = vpack.c.bf16 %v440_v36, %v439_v35 }
 0x152   : > { %v401_v40 = vadd.f32 %v861_v38, %v773_v24  ;;  %v392_v41 = vpop.f32.mrb[5].mxu0 }
 0x153   : > { %v393_v42 = vadd.f32 %v773_v24, %v392_v41  ;;  %v862_v43 = vpop.f32.mrb[6].mxu0  ;;  %887 = vmatprep.mubr.bf16.mxu1 %v455_v39 }
 0x154   : > { %v404_v44 = vadd.f32 %v862_v43, %v773_v24  ;;  %v395_v45 = vpop.f32.mrb[7].mxu0  ;;  %888 = vmatmul.mubr.bf16.vlgmr.msra.gmra.mrb[0].mxu1 %v456_v37  ;;  %v445_v47 = vmax.f32 %v401_v40, 0.0 }
 0x155   : > { %v396_v46 = vadd.f32 %v773_v24, %v395_v45  ;;  %v443_v49 = vmax.f32 %v393_v42, 0.0 }
 0x156   : > { %v446_v48 = vmax.f32 %v404_v44, 0.0 }
 0x157   : > { %v444_v50 = vmax.f32 %v396_v46, 0.0 }
 0x158   : > { %v458_v51 = vpack.c.bf16 %v446_v48, %v445_v47 }
 0x159   : > { %v457_v52 = vpack.c.bf16 %v444_v50, %v443_v49  ;;  %v865_v53 = vpop.f32.mrb[8].mxu0 }
 0x15a   : > { %v417_v54 = vadd.f32 %v865_v53, %v773_v24  ;;  %v408_v55 = vpop.f32.mrb[9].mxu0 }
 0x15b   : > { %v409_v56 = vadd.f32 %v773_v24, %v408_v55  ;;  %v866_v57 = vpop.f32.mrb[10].mxu0  ;;  %891 = vmatprep.mubr.bf16.mxu1 %v457_v52 }
 0x15c   : > { %v420_v58 = vadd.f32 %v866_v57, %v773_v24  ;;  %v411_v59 = vpop.f32.mrb[11].mxu0  ;;  %892 = vmatmul.mubr.bf16.gmra.mrb[4].mxu1 %v458_v51  ;;  %v449_v61 = vmax.f32 %v417_v54, 0.0 }
 0x15d   : > { %v412_v60 = vadd.f32 %v773_v24, %v411_v59  ;;  %v447_v63 = vmax.f32 %v409_v56, 0.0 }
 0x15e   : > { %v450_v62 = vmax.f32 %v420_v58, 0.0 }
 0x15f   : > { %v448_v0 = vmax.f32 %v412_v60, 0.0 }
 0x160   : > { %v460_v1 = vpack.c.bf16 %v450_v62, %v449_v61 }
 0x161   : > { %v459_v2 = vpack.c.bf16 %v448_v0, %v447_v63  ;;  %v869_v3 = vpop.f32.mrb[12].mxu0 }
 0x162   : > { %v433_v4 = vadd.f32 %v869_v3, %v773_v24  ;;  %v424_v5 = vpop.f32.mrb[13].mxu0 }
 0x163   : > { %v425_v6 = vadd.f32 %v773_v24, %v424_v5  ;;  %v870_v7 = vpop.f32.mrb[14].mxu0  ;;  %895 = vmatprep.mubr.bf16.mxu1 %v459_v2 }
 0x164   : > { %v436_v8 = vadd.f32 %v870_v7, %v773_v24  ;;  %v427_v9 = vpop.f32.mrb[15].mxu0  ;;  %896 = vmatmul.mubr.bf16.gmra.mrb[8].mxu1 %v460_v1  ;;  %v453_v11 = vmax.f32 %v433_v4, 0.0 }
 0x165   : > { %v428_v10 = vadd.f32 %v773_v24, %v427_v9  ;;  %v451_v13 = vmax.f32 %v425_v6, 0.0 }
 0x166   : > { %v454_v12 = vmax.f32 %v436_v8, 0.0 }
 0x167   : > { %v452_v14 = vmax.f32 %v428_v10, 0.0 }
 0x168   : > { %v462_v15 = vpack.c.bf16 %v454_v12, %v453_v11 }
 0x169   : > { %v461_v16 = vpack.c.bf16 %v452_v14, %v451_v13 }
 0x16b   : > { %899 = vmatprep.mubr.bf16.mxu1 %v461_v16 }
 0x16c   : > { %900 = vmatmul.mubr.bf16.gmra.mrb[12].mxu1 %v462_v15 }
 0x227   : > { %v889_v18 = vpop.f32.mrb[0].mxu1 }
 0x228   : > { %v579_v19 = vadd.f32 %v889_v18, %v791_v17  ;;  %v570_v20 = vpop.f32.mrb[1].mxu1 }
 0x229   : > { %v571_v21 = vadd.f32 %v791_v17, %v570_v20  ;;  %v890_v22 = vpop.f32.mrb[2].mxu1 }
 0x22a   : > { %v635_v23 = vmax.f32 %v579_v19, 0.0  ;;  %v582_v24 = vadd.f32 %v890_v22, %v791_v17  ;;  %v573_v25 = vpop.f32.mrb[3].mxu1 }
 0x22b   : > { %v633_v26 = vmax.f32 %v571_v21, 0.0  ;;  %v574_v27 = vadd.f32 %v791_v17, %v573_v25 }
 0x22c   : > { %651 = vst [vmem:[%s1319_s25 + $0x10] sm:$0xff] %v635_v23  ;;  %v636_v28 = vmax.f32 %v582_v24, 0.0 }
 0x22d   : > { %649 = vst [vmem:[%s1319_s25] sm:$0xff] %v633_v26  ;;  %v634_v29 = vmax.f32 %v574_v27, 0.0 }
 0x22e   : > { %652 = vst [vmem:[%s1319_s25 + $0x18] sm:$0xff] %v636_v28 }
 0x22f   : > { %650 = vst [vmem:[%s1319_s25 + $0x8] sm:$0xff] %v634_v29  ;;  %v893_v30 = vpop.f32.mrb[4].mxu1 }
 0x230   : > { %v595_v31 = vadd.f32 %v893_v30, %v791_v17  ;;  %v586_v32 = vpop.f32.mrb[5].mxu1 }
 0x231   : > { %v587_v33 = vadd.f32 %v791_v17, %v586_v32  ;;  %v894_v34 = vpop.f32.mrb[6].mxu1 }
 0x232   : > { %v639_v35 = vmax.f32 %v595_v31, 0.0  ;;  %v598_v36 = vadd.f32 %v894_v34, %v791_v17  ;;  %v589_v37 = vpop.f32.mrb[7].mxu1 }
 0x233   : > { %v637_v38 = vmax.f32 %v587_v33, 0.0  ;;  %v590_v39 = vadd.f32 %v791_v17, %v589_v37 }
 0x234   : > { %655 = vst [vmem:[%s1319_s25 + $0x30] sm:$0xff] %v639_v35  ;;  %v640_v40 = vmax.f32 %v598_v36, 0.0 }
 0x235   : > { %653 = vst [vmem:[%s1319_s25 + $0x20] sm:$0xff] %v637_v38  ;;  %v638_v41 = vmax.f32 %v590_v39, 0.0 }
 0x236   : > { %656 = vst [vmem:[%s1319_s25 + $0x38] sm:$0xff] %v640_v40 }
 0x237   : > { %654 = vst [vmem:[%s1319_s25 + $0x28] sm:$0xff] %v638_v41  ;;  %v897_v42 = vpop.f32.mrb[8].mxu1 }
 0x238   : > { %v611_v43 = vadd.f32 %v897_v42, %v791_v17  ;;  %v602_v44 = vpop.f32.mrb[9].mxu1 }
 0x239   : > { %v603_v45 = vadd.f32 %v791_v17, %v602_v44  ;;  %v898_v46 = vpop.f32.mrb[10].mxu1 }
 0x23a   : > { %v643_v47 = vmax.f32 %v611_v43, 0.0  ;;  %v614_v48 = vadd.f32 %v898_v46, %v791_v17  ;;  %v605_v49 = vpop.f32.mrb[11].mxu1 }
 0x23b   : > { %v641_v50 = vmax.f32 %v603_v45, 0.0  ;;  %v606_v51 = vadd.f32 %v791_v17, %v605_v49 }
 0x23c   : > { %659 = vst [vmem:[%s1319_s25 + $0x50] sm:$0xff] %v643_v47  ;;  %v644_v52 = vmax.f32 %v614_v48, 0.0 }
 0x23d   : > { %657 = vst [vmem:[%s1319_s25 + $0x40] sm:$0xff] %v641_v50  ;;  %v642_v53 = vmax.f32 %v606_v51, 0.0 }
 0x23e   : > { %660 = vst [vmem:[%s1319_s25 + $0x58] sm:$0xff] %v644_v52 }
 0x23f   : > { %658 = vst [vmem:[%s1319_s25 + $0x48] sm:$0xff] %v642_v53  ;;  %v901_v54 = vpop.f32.mrb[12].mxu1 }
 0x240   : > { %v627_v55 = vadd.f32 %v901_v54, %v791_v17  ;;  %v618_v56 = vpop.f32.mrb[13].mxu1 }
 0x241   : > { %v619_v57 = vadd.f32 %v791_v17, %v618_v56  ;;  %v902_v58 = vpop.f32.mrb[14].mxu1 }
 0x242   : > { %v647_v59 = vmax.f32 %v627_v55, 0.0  ;;  %v630_v60 = vadd.f32 %v902_v58, %v791_v17  ;;  %v621_v61 = vpop.f32.mrb[15].mxu1 }
 0x243   : > { %v645_v62 = vmax.f32 %v619_v57, 0.0  ;;  %v622_v63 = vadd.f32 %v791_v17, %v621_v61 }
 0x244   : > { %663 = vst [vmem:[%s1319_s25 + $0x70] sm:$0xff] %v647_v59  ;;  %v648_v0 = vmax.f32 %v630_v60, 0.0 }
 0x245   : > { %661 = vst [vmem:[%s1319_s25 + $0x60] sm:$0xff] %v645_v62  ;;  %v646_v1 = vmax.f32 %v622_v63, 0.0 }
 0x246   : > { %664 = vst [vmem:[%s1319_s25 + $0x78] sm:$0xff] %v648_v0 }
 0x247   : > { %662 = vst [vmem:[%s1319_s25 + $0x68] sm:$0xff] %v646_v1 }
 0x248   : > { %1059 = shalt.err (!%p1056_p7)
}
 0x249   : > { %s1060_s10 = scalar_lea.hbm %s1339_s23, 2048  ;;  %s1064_s20 = scalar_lea.hbm %s1391_s3, 4096 }
 0x24a   : > { %p1061_p9 = scmp.ne.s32.totalorder %s1339_s23, %s1060_s10  ;;  %p1065_p5 = scmp.lt.u32.totalorder %s1339_s23, %s1391_s3 }
 0x24b   : > { %p1066_p11 = scmp.lt.u32.totalorder %s1064_s20, %s1060_s10  ;;  %p1068_p4 = scmp.lt.u32.totalorder %s1060_s10, %s1339_s23 }
 0x24c   : > { %p1062_p1 = pnand %p1061_p9, %p1239_p12 }
 0x24d   : > { %p1067_p2 = por %p1066_p11, %p1065_p5 }
 0x24e   : > { %p1063_p0 = pneg %p1062_p1 }
 0x24f   : > { %p1069_p6 = por %p1068_p4, %p1067_p2 }
 0x251   : > { %p1070_p8 = pnand %p1069_p6, %p1063_p0 }
 0x253   : > { %1073 = shalt.err (!%p1070_p8)
}
 0x254   : > { %s1123_s4 = smov 128   ;;  %s1124_s25 = smov 8  }
 0x255   : > { %909 = dma.vmem_to_hbm [thread:$0]  (%p1239_p12), %s1341_s5, 2048, %s1339_s23, %s666_s16, %s1123_s4, %s1123_s4, %s1124_s25  }
 0x256 PF: > { %s694_s26 = sand.u32 1, %s1104_s12   ;;  %p1406_p10 = scmp.ne.s32.totalorder %s1396_s19, 0 }
 0x257   : > { %p1407_p13 = scmp.ge.s32.totalorder %s1116_s15, 2  ;;  %s695_s27 = scalar_lea.sflag [#allocation4], %s694_s26 }
 0x259   : > { %p920_p3 = pnand %p1407_p13, %p1406_p10 }
 0x25b   : > { %1099 = dma.done.wait (!%p920_p3), %s695_s27, 2048  }
 0x25c   : > { %1101 = vsyncadd (!%p920_p3), %s695_s27, 4294965248  ;;  %p17_p7 = scmp.ge.s32.totalorder %s1201_s24, 4   ;;  %s1408_s12 = smov %s1108_s13 }
 0x25d   : > { %s1409_s13 = smov %s1112_s14  ;;  %s1410_s14 = smov %s1235_s17 }
 0x25e   : > { %s1411_s15 = smov %s1201_s24  ;;  %19 = sbr.rel (!%p17_p7) target bundleno = 6 (0x6), region = 83 }
 0x265   :  { %700 = vsyncpa [#allocation3], 1 }
 0x266   :  { %702 = vsyncpa [#allocation3 + $0x1], 1 }
 0x267   :  { %703 = vsyncpa [#allocation6], 1 }
 0x268   :  { %704 = vsyncpa [#allocation4], 1 }
 0x269   :  { %706 = vsyncpa [#allocation4 + $0x1], 1 }

</bundles_post_ra>
